<compile_context>
chip_gen: v7x
topology: tpu7x:2x2x1
jax: 0.10.0
libtpu: 0.0.40
codegen_flags: <defaults>
</compile_context>

<pallas_src>
import math

import jax
import jax.numpy as jnp
from jax.experimental import pallas as pl
from jax.experimental.pallas import tpu as pltpu

_LANE = 128
_MIN_BLOCK_BYTES = 512 * 1024  # amortizes the ~0.35us per-grid-step overhead


def _round_down(x, m):
    return (x // m) * m


def _round_up(x, m):
    return -(-x // m) * m


def _make_clamp_kernel(low, high):
    def kernel(x_ref, o_ref):
        x = x_ref[...]
        hi = jnp.asarray(high, dtype=x.dtype)
        lo = jnp.asarray(low, dtype=x.dtype)
        # Exactly matches PyTorch masked-assignment order:
        #   out[x > high] = high  (== min(x, high) on the not-below-low branch)
        #   out[x < low]  = low
        # NaNs pass through (NaN < lo is False, jnp.minimum propagates NaN) and
        # the degenerate low > high ordering is preserved.
        # TODO(synk): for integer dtypes the float bounds are truncated on cast;
        # confirm that matches the intended PyTorch behavior.
        o_ref[...] = jnp.where(x < lo, lo, jnp.minimum(x, hi))

    return kernel


def _vmem_budget():
    """Generation-aware (target_block_bytes, vmem_limit_bytes)."""
    cap = None
    try:
        info = pltpu.get_tpu_info()
        cap = int(getattr(info, "vmem_capacity_bytes", 0)) or None
    except Exception:
        cap = None
    if cap is None:
        cap = 64 * 1024 * 1024  # conservative (v7x-sized) fallback
    if cap <= 64 * 1024 * 1024:
        # v7x: 64 MiB physical VMEM, ~3.2 TB/s HBM -> large blocks pay off.
        # 4 double-buffered copies x 8 MiB = 32 MiB <= 44 MiB explicit limit.
        return 8 * 1024 * 1024, 44 * 1024 * 1024
    # v5e / v6e: 128 MiB physical VMEM; 4 MiB blocks are already ~roofline
    # (4 x 4 MiB = 16 MiB pipelined footprint, 32 MiB explicit limit).
    return 4 * 1024 * 1024, 32 * 1024 * 1024


def _fold_to_2d(shape):
    """Free row-major refold of a contiguous array to a lane-dense (rows, cols) view."""
    if len(shape) == 0:
        rows, cols = 1, 1
    elif len(shape) == 1:
        rows, cols = 1, int(shape[0])
    else:
        split = len(shape) - 1
        cols = int(shape[-1])
        # Fold trailing dims into the lane axis until it is comfortably wide.
        while split > 1 and cols < 512:
            split -= 1
            cols *= int(shape[split])
        rows = int(math.prod(shape[:split]))
    total = rows * cols
    # If the lane axis is still narrow or not 128-aligned, fully flatten and
    # re-tile to (total // L, L) with L a large multiple of 128 -> unmasked vst.
    if total > 0 and (cols < 512 or cols % _LANE != 0) and total % _LANE == 0:
        L = _LANE
        while L < 16384 and total % (L * 2) == 0:
            L *= 2
        if L > cols or cols % _LANE != 0:
            rows, cols = total // L, L
    return rows, cols


def _choose_tiles(rows, cols, itemsize, sublane, target_block_bytes):
    """Pick (row_tile, col_tile) that fit the VMEM budget and keep the pipeline busy."""
    row_bytes = cols * itemsize

    if sublane * row_bytes > target_block_bytes and cols > 2 * _LANE:
        # Very wide rows (huge cols / 1-D inputs): tile the lane axis too so a
        # block always fits VMEM and DMA-in/compute/DMA-out stay overlapped.
        tc = _round_down(max(target_block_bytes // (sublane * itemsize), _LANE), _LANE)
        tc = max(_LANE, min(tc, max(_LANE, _round_down(cols, _LANE))))
        tr = max(sublane, _round_down(target_block_bytes // max(1, tc * itemsize), sublane))
        if tr >= rows:
            tr = rows  # full-extent rows: always layout-legal
        return tr, tc

    # Normal path: full-extent lane axis, tile rows.
    tc = cols
    tr = max(sublane, _round_down(target_block_bytes // max(1, row_bytes), sublane))
    if tr >= rows:
        total_bytes = rows * row_bytes
        if rows >= 2 * sublane and total_bytes >= 2 * _MIN_BLOCK_BYTES:
            # Whole array fits one target block: still split into a few steps so
            # both v7x TensorCores and the DMA pipeline get used (>= 2, <= 8
            # steps, each block >= ~512 KiB).
            n_steps = min(8, rows // sublane, max(2, total_bytes // _MIN_BLOCK_BYTES))
            tr = min(rows, _round_up(-(-rows // n_steps), sublane))
        else:
            tr = rows  # tiny tensor: one block
    return tr, tc


def double_block_linear_unit_forward(x: jax.Array, low=0.0, high=1.0, k=1.0) -> jax.Array:
    """Pallas implementation of DoubleBlockLinearUnit.forward (clamp to [low, high])."""
    # `k` is unused by the reference forward; kept for signature parity.
    orig_shape = x.shape
    if x.size == 0:
        return x

    rows, cols = _fold_to_2d(orig_shape)
    x2d = x.reshape(rows, cols)

    itemsize = jnp.dtype(x.dtype).itemsize
    sublane = {4: 8, 2: 16, 1: 32}.get(itemsize, 8)

    target_block_bytes, vmem_limit_bytes = _vmem_budget()
    tr, tc = _choose_tiles(rows, cols, itemsize, sublane, target_block_bytes)

    grid = (pl.cdiv(rows, tr), pl.cdiv(cols, tc))
    total_elems = rows * cols

    out2d = pl.pallas_call(
        _make_clamp_kernel(low, high),
        out_shape=jax.ShapeDtypeStruct((rows, cols), x2d.dtype),
        grid=grid,
        in_specs=[pl.BlockSpec((tr, tc), lambda i, j: (i, j))],
        out_specs=pl.BlockSpec((tr, tc), lambda i, j: (i, j)),
        compiler_params=pltpu.CompilerParams(
            # All tiles are independent: lets the grid shard across the two
            # TensorCores on v7x; neutral on v5e/v6e.
            dimension_semantics=("parallel", "parallel"),
            vmem_limit_bytes=vmem_limit_bytes,
        ),
        cost_estimate=pl.CostEstimate(
            flops=2 * total_elems,
            transcendentals=0,
            bytes_accessed=2 * total_elems * itemsize,
        ),
    )(x2d)

    return out2d.reshape(orig_shape)


if __name__ == "__main__":
    key = jax.random.PRNGKey(0)
    # Scale inputs so both clamp branches (x > 1.0 and x < 0.0) are exercised.
    x = jax.random.normal(key, (2, 4, 16, 16), dtype=jnp.float32) * 2.0

    low, high = 0.0, 1.0
    y = double_block_linear_unit_forward(x, low=low, high=high)
    jax.block_until_ready(y)

    # Pure-JAX reference with the same masked-assignment semantics as PyTorch.
    ref = jnp.where(x > high, jnp.float32(high), x)
    ref = jnp.where(x < low, jnp.float32(low), ref)

    assert y.shape == x.shape and y.dtype == x.dtype
    assert bool(jnp.all(y == ref))
    print("KERNEL_OK")
</pallas_src>

<mosaic_0001>
module attributes {stable_mosaic.version = 11 : i64} {
  func.func @kernel(%arg0: i32, %arg1: i32, %arg2: memref<2x1024xf32, #tpu.memory_space<vmem>>, %arg3: memref<2x1024xf32, #tpu.memory_space<vmem>>) attributes {dimension_semantics = [#tpu.dimension_semantics<parallel>, #tpu.dimension_semantics<parallel>], iteration_bounds = array<i64: 1, 1>, scalar_prefetch = 0 : i64, scratch_operands = 0 : i64, tpu.core_type = #tpu.core_type<tc>, window_params = [{transform_indices = @transform_0, window_bounds = array<i64: 2, 1024>}, {transform_indices = @transform_1, window_bounds = array<i64: 2, 1024>}]} {
    %c0 = arith.constant 0 : index
    %c0_0 = arith.constant 0 : index
    %0 = vector.load %arg2[%c0, %c0_0] : memref<2x1024xf32, #tpu.memory_space<vmem>>, vector<2x1024xf32>
    %cst = arith.constant 0.000000e+00 : f32
    %1 = vector.broadcast %cst : f32 to vector<2x1024xf32>
    %2 = arith.cmpf olt, %0, %1 : vector<2x1024xf32>
    %cst_1 = arith.constant 1.000000e+00 : f32
    %3 = vector.broadcast %cst_1 : f32 to vector<2x1024xf32>
    %4 = arith.minimumf %0, %3 : vector<2x1024xf32>
    %cst_2 = arith.constant 0.000000e+00 : f32
    %5 = vector.broadcast %cst_2 : f32 to vector<2x1024xf32>
    %6 = arith.select %2, %5, %4 : vector<2x1024xi1>, vector<2x1024xf32>
    %c0_3 = arith.constant 0 : index
    %c0_4 = arith.constant 0 : index
    %7 = vector.load %arg3[%c0_3, %c0_4] : memref<2x1024xf32, #tpu.memory_space<vmem>>, vector<2x1024xf32>
    tpu.vector_store %arg3[%c0_3, %c0_4], %6 {strides = array<i32>} : memref<2x1024xf32, #tpu.memory_space<vmem>>, vector<2x1024xf32>,
    return
  }
  func.func @transform_0(%arg0: i32, %arg1: i32) -> (i32, i32) {
    %c0_i32 = arith.constant 0 : i32
    return %arg0, %arg1 : i32, i32
  }
  func.func @transform_1(%arg0: i32, %arg1: i32) -> (i32, i32) {
    %c0_i32 = arith.constant 0 : i32
    return %arg0, %arg1 : i32, i32
  }
}

</mosaic_0001>

<bundles_post_ra>
// kernel: tpu_custom_call.1
= control target key start
LH: loop header
LB: loop body
LE: loop exit
PB: predicated region body
PF: predicated region fallthrough
CT: control target
= control target key end

     0   :  { %6 = vsyncpa [#allocation3], 0  ;;  %s132_s0 = inlined_call_operand.hbm [shape: f32[2,1024], index: 0, kind: input, shape index: {}]   ;;  %s133_s1 = inlined_call_operand.hbm [shape: f32[2,1024], index: 1, kind: output, shape index: {}]  }
   0x1   :  { %7 = vsyncpa [#allocation4], 0  ;;  %s96_s6 = smov [#allocation2]   ;;  %s48_s10 = scalar_lea.hbm %s132_s0, 256 }
   0x2   :  { %s14_s7 = sshll.u32 %s96_s6, 4  ;;  %p49_p0 = scmp.ne.s32.totalorder %s132_s0, %s48_s10  ;;  %s15_s7 = int_to_ptr.vmem [resolvable:$true] %s14_s7 }
   0x3   :  { %p52_p1 = scmp.lt.u32.totalorder %s48_s10, %s132_s0 }
   0x5   :  { %p54_p2 = pnand %p52_p1, %p49_p0 }
   0x7   :  { %57 = shalt.err (!%p54_p2)
}
   0x8   :  { %s58_s15 = scalar_lea.vmem %s15_s7, 256  ;;  %p63_p4 = scmp.lt.s32.totalorder %s15_s7, %s15_s7 }
   0x9   :  { %p59_p3 = scmp.ne.s32.totalorder %s15_s7, %s58_s15  ;;  %p64_p5 = scmp.lt.s32.totalorder %s58_s15, %s58_s15 }
   0xb   :  { %p65_p6 = por %p64_p5, %p63_p4 }
   0xd   :  { %p66_p7 = pnand %p65_p6, %p59_p3 }
   0xf   :  { %69 = shalt.err (!%p66_p7)
}
  0x10   :  { %17 = dma.hbm_to_vmem [thread:$0]  %s132_s0, 256, %s15_s7, [#allocation3]  }
  0x11   :  { %92 = dma.done.wait [#allocation3], 256  }
  0x12   :  { %93 = vsyncadd [#allocation3], 4294967040  ;;  %s97_s18 = smov [#allocation5]   ;;  %v21_v0 = vld [vmem:[#allocation2] sm:$0xff]  ;;  %v22_v1 = vld [vmem:[#allocation2 + $0x8] sm:$0xff] }
  0x13   :  { %s37_s19 = sshll.u32 %s97_s18, 4  ;;  %vm23_vm0 = vcmp.lt.f32.partialorder %v21_v0, 0.0  ;;  %v25_v2 = vmin.f32 %v21_v0, 1.0  ;;  %vm24_vm1 = vcmp.lt.f32.partialorder %v22_v1, 0.0  ;;  %v26_v3 = vmin.f32 %v22_v1, 1.0  ;;  %s38_s19 = int_to_ptr.vmem [resolvable:$true] %s37_s19 }
  0x14   :  { %s70_s20 = scalar_lea.vmem %s38_s19, 256  ;;  %p75_p9 = scmp.lt.s32.totalorder %s38_s19, %s38_s19 }
  0x15   :  { %v27_v4 = vsel %vm23_vm0, 0.0, %v25_v2  ;;  %v28_v5 = vsel %vm24_vm1, 0.0, %v26_v3  ;;  %p71_p8 = scmp.ne.s32.totalorder %s38_s19, %s70_s20  ;;  %p76_p10 = scmp.lt.s32.totalorder %s70_s20, %s70_s20 }
  0x16   :  { %29 = vst [vmem:[#allocation5] sm:$0xff] %v27_v4  ;;  %30 = vst [vmem:[#allocation5 + $0x8] sm:$0xff] %v28_v5 }
  0x17   :  { %p77_p11 = por %p76_p10, %p75_p9 }
  0x19   :  { %p78_p12 = pnand %p77_p11, %p71_p8 }
  0x1b   :  { %81 = shalt.err (!%p78_p12)
}
  0x1c   :  { %s82_s22 = scalar_lea.hbm %s133_s1, 256 }
  0x1d   :  { %p83_p13 = scmp.ne.s32.totalorder %s133_s1, %s82_s22  ;;  %p86_p0 = scmp.lt.u32.totalorder %s82_s22, %s133_s1 }
  0x1f   :  { %p88_p1 = pnand %p86_p0, %p83_p13 }
  0x21   :  { %91 = shalt.err (!%p88_p1)
}
  0x22   :  { %40 = dma.vmem_to_hbm [thread:$0]  %s38_s19, 256, %s133_s1, [#allocation4]  }
  0x23   :  { %94 = dma.done.wait [#allocation4], 256  }
  0x24   :  { %95 = vsyncadd [#allocation4], 4294967040 }
  0x25   :  { %44 = vsyncpa [#allocation3], 1 }
  0x26   :  { %45 = vsyncpa [#allocation4], 1 }

</bundles_post_ra>
